<compile_context>
chip_gen: v7x
topology: tpu7x:2x2x1
jax: 0.10.0
libtpu: 0.0.40
codegen_flags: <defaults>
</compile_context>

<pallas_src>
from functools import partial

import jax
import jax.numpy as jnp
from jax.experimental import pallas as pl
from jax.experimental.pallas import tpu as pltpu

LANE = 128
_MP_VMEM_LIMIT = 48 * 1024 * 1024   # <= ~48 MiB: headroom under v7x's 64 MiB VMEM
_LIN_VMEM_LIMIT = 32 * 1024 * 1024
_XW_RESIDENT_BYTES = 8 * 1024 * 1024  # keep xW fully VMEM-resident up to this size


def _round_up(x, m):
    return ((x + m - 1) // m) * m


def _pad2(a, rows, cols):
    return jnp.pad(a, ((0, rows - a.shape[0]), (0, cols - a.shape[1])))


# ----------------------------------------------------------------------------
# Pallas kernels
# ----------------------------------------------------------------------------

def _linear_kernel(*refs, apply_act, add_bias):
    """y = x @ W (+ b) (+ ReLU) for one row tile; everything lane-padded."""
    if add_bias:
        x_ref, w_ref, b_ref, o_ref = refs
    else:
        x_ref, w_ref, o_ref = refs
    y = jnp.dot(x_ref[...], w_ref[...], preferred_element_type=jnp.float32)
    if add_bias:
        y = y + b_ref[...]                 # b is [1, C_pad], broadcasts over rows
    if apply_act:
        y = jnp.maximum(y, 0.0)
    o_ref[...] = y.astype(o_ref.dtype)


def _mp_fused_kernel(adj_ref, xw_ref, dinv_ref, b_ref, o_ref, *, tk, xw_resident):
    """o += A_counts_tile @ xW ; last k step: o = ReLU(o * (1/deg) + b).

    The output block index is constant along k, so o_ref stays VMEM-resident
    across the whole reduction and doubles as the f32 accumulator (no scratch).
    """
    k = pl.program_id(1)

    @pl.when(k == 0)
    def _init():
        o_ref[...] = jnp.zeros_like(o_ref)

    if xw_resident:
        off = pl.multiple_of(k * tk, tk)
        xw = xw_ref[pl.ds(off, tk), :]      # slice the VMEM-resident xW
    else:
        xw = xw_ref[...]                    # tiled fallback

    o_ref[...] += jnp.dot(adj_ref[...], xw, preferred_element_type=jnp.float32)

    @pl.when(k == pl.num_programs(1) - 1)
    def _finalize():
        y = o_ref[...] * dinv_ref[...] + b_ref[...]   # exact f32 1/deg row scale
        o_ref[...] = jnp.maximum(y, 0.0)


# ----------------------------------------------------------------------------
# Wrappers
# ----------------------------------------------------------------------------

def linear_pallas(x, w, b=None, *, apply_act=False, out_dtype=jnp.float32, tm=None):
    """Row-tiled x @ W (+ b) (+ ReLU); x is [N_pad, Cin_pad], W is [Cin_pad, Cout_pad]."""
    n, c_in = x.shape
    c_out = w.shape[1]
    tm = tm or n
    in_specs = [
        pl.BlockSpec((tm, c_in), lambda i: (i, 0)),
        pl.BlockSpec((c_in, c_out), lambda i: (0, 0)),
    ]
    args = [x, w]
    if b is not None:
        in_specs.append(pl.BlockSpec((1, c_out), lambda i: (0, 0)))
        args.append(b)

    return pl.pallas_call(
        partial(_linear_kernel, apply_act=apply_act, add_bias=b is not None),
        out_shape=jax.ShapeDtypeStruct((n, c_out), out_dtype),
        grid=(n // tm,),
        in_specs=in_specs,
        out_specs=pl.BlockSpec((tm, c_out), lambda i: (i, 0)),
        compiler_params=pltpu.CompilerParams(
            dimension_semantics=("parallel",),
            vmem_limit_bytes=_LIN_VMEM_LIMIT),
    )(*args)


def mp_bias_act_pallas(adj_counts, xw, deg_inv, b, *, tm, tk):
    """Tiled ReLU((A_counts @ xW) * deg_inv + b). A/xW bf16, f32 accumulation."""
    n_pad = adj_counts.shape[0]
    c_pad = xw.shape[1]
    grid = (n_pad // tm, n_pad // tk)

    xw_resident = n_pad * c_pad * xw.dtype.itemsize <= _XW_RESIDENT_BYTES
    if xw_resident:
        xw_spec = pl.BlockSpec((n_pad, c_pad), lambda i, k: (0, 0))  # loaded once
    else:
        xw_spec = pl.BlockSpec((tk, c_pad), lambda i, k: (k, 0))     # tiled fallback

    return pl.pallas_call(
        partial(_mp_fused_kernel, tk=tk, xw_resident=xw_resident),
        out_shape=jax.ShapeDtypeStruct((n_pad, c_pad), jnp.float32),
        grid=grid,
        in_specs=[
            pl.BlockSpec((tm, tk), lambda i, k: (i, k)),      # A counts tile (bf16)
            xw_spec,                                          # xW (bf16)
            pl.BlockSpec((tm, 1), lambda i, k: (i, 0)),       # per-row 1/deg (f32)
            pl.BlockSpec((1, c_pad), lambda i, k: (0, 0)),    # bias (constant)
        ],
        out_specs=pl.BlockSpec((tm, c_pad), lambda i, k: (i, 0)),
        compiler_params=pltpu.CompilerParams(
            dimension_semantics=("parallel", "arbitrary"),
            vmem_limit_bytes=_MP_VMEM_LIMIT),
    )(adj_counts, xw, deg_inv, b)


# ----------------------------------------------------------------------------
# Graph preparation (hoisted out of the forward), params, forward
# ----------------------------------------------------------------------------

def _choose_mp_tiles(n):
    """Pick (n_pad, tm, tk) for the A@(xW) kernel.

    * lane dim of A (== N) padded to a multiple of 128 (lane-dense bf16 tiles)
    * large tiles (up to 2048) amortize the ~0.35us per-grid-step overhead
    * >= 2 row tiles whenever possible so both v7x TensorCores get work
    * row padding kept modest so the padded N^2 HBM stream doesn't blow up
    """
    if n <= 256:
        n_pad = _round_up(n, LANE)
        tm = n_pad // 2 if n_pad > LANE else n_pad
        return n_pad, tm, n_pad
    for t in (2048, 1024, 512, 256):
        n_pad = _round_up(n, t)
        if n_pad // t >= 2 and (n_pad - n) <= max(n // 8, t // 2):
            return n_pad, t, t
    n_pad = _round_up(n, 256)
    return n_pad, 256, 256


def prepare_graph(edge_index, num_nodes):
    """Build the padded bf16 edge-count matrix + exact f32 per-row 1/deg ONCE.

    Hoisted out of the forward: the N^2 scatter-add / pad / cast is paid a
    single time and reused across layers and across forward calls. Counts are
    small integers -> exact in bf16; normalization stays exact f32 in-kernel.
    """
    n_pad, tm, tk = _choose_mp_tiles(num_nodes)
    src, dst = edge_index[0], edge_index[1]
    counts = jnp.zeros((n_pad, n_pad), jnp.float32).at[dst, src].add(1.0)
    deg_inv = 1.0 / jnp.maximum(counts.sum(axis=1, keepdims=True), 1.0)
    return counts.astype(jnp.bfloat16), deg_inv, (n_pad, tm, tk)


def init_params(key, in_channels, hidden_channels, out_channels, num_layers, bias=True):
    """Deterministic synthetic init matching the nn.ModuleList shape sequence."""
    dims = [in_channels] + [hidden_channels] * (num_layers - 1) + [out_channels]
    params = []
    for i in range(num_layers):
        key, kw, kb = jax.random.split(key, 3)
        fan_in, fan_out = dims[i], dims[i + 1]
        bound = 1.0 / jnp.sqrt(jnp.float32(fan_in))
        w = jax.random.uniform(kw, (fan_in, fan_out), jnp.float32, -bound, bound)
        b = (jax.random.uniform(kb, (1, fan_out), jnp.float32, -bound, bound)
             if bias else jnp.zeros((1, fan_out), jnp.float32))
        params.append((w, b))
    return params


def base_hgnn_forward(params, x, adj_counts, deg_inv, tiles, num_layers=2):
    """BaseHGNN.forward:
         x = layers[0](x)
         for i in 1..num_layers-1:
             (dropout p=0.0 default -> identity)
             x = _message_passing(x, edge_index)   # mean aggregation A @ x
             x = layers[i](x)
             x = relu(x)
    """
    n, c_in = x.shape
    n_pad, tm, tk = tiles
    c_out_final = params[-1][0].shape[1]

    x_p = _pad2(x.astype(jnp.float32), n_pad, _round_up(c_in, LANE))

    # Layer 0: linear, no activation.
    w0, b0 = params[0]
    w0_p = _pad2(w0, _round_up(w0.shape[0], LANE), _round_up(w0.shape[1], LANE))
    b0_p = _pad2(b0, 1, _round_up(w0.shape[1], LANE))
    h = linear_pallas(x_p, w0_p, b0_p, apply_act=False, out_dtype=jnp.float32, tm=tm)

    for i in range(1, num_layers):
        # TODO(synk): dropout > 0 not modelled (module default p=0.0 -> identity).
        w, b = params[i]
        ci, co = w.shape
        w_p = _pad2(w, _round_up(ci, LANE), _round_up(co, LANE))
        b_p = _pad2(b, 1, _round_up(co, LANE))
        # Reassociated: (A @ h) @ W + b == A @ (h @ W) + b ; narrow bf16 RHS for
        # the N^2 matmul, fused exact 1/deg scale + bias + ReLU in finalize.
        xw = linear_pallas(h, w_p, None, apply_act=False,
                           out_dtype=jnp.bfloat16, tm=tm)
        h = mp_bias_act_pallas(adj_counts, xw, deg_inv, b_p, tm=tm, tk=tk)
        # Invariant: padded rows of h equal ReLU(b); they never leak into real
        # rows because the corresponding columns of adj_counts are zero.
    # TODO(synk): for num_layers > 2, fuse the layer loop so A is streamed once.

    return h[:n, :c_out_final]


# ----------------------------------------------------------------------------
# Pure-JAX reference (precision-matched: bf16 counts/xW, exact f32 1/deg)
# ----------------------------------------------------------------------------

def _reference_forward(params, x, edge_index, num_layers=2):
    n = x.shape[0]
    src, dst = edge_index[0], edge_index[1]
    counts = jnp.zeros((n, n), jnp.float32).at[dst, src].add(1.0)
    deg_inv = 1.0 / jnp.maximum(counts.sum(axis=1, keepdims=True), 1.0)
    counts = counts.astype(jnp.bfloat16).astype(jnp.float32)
    w0, b0 = params[0]
    h = x @ w0 + b0
    for i in range(1, num_layers):
        w, b = params[i]
        xw = (h @ w).astype(jnp.bfloat16).astype(jnp.float32)
        h = jnp.maximum((counts @ xw) * deg_inv + b, 0.0)
    return h


if __name__ == "__main__":
    key = jax.random.PRNGKey(0)

    def run_case(n, e, c_in, c_hid, c_out, num_layers, case_key):
        k_x, k_e, k_p = jax.random.split(case_key, 3)
        x = jax.random.normal(k_x, (n, c_in), jnp.float32)
        edge_index = jax.random.randint(k_e, (2, e), 0, n, jnp.int32)
        params = init_params(k_p, c_in, c_hid, c_out, num_layers, bias=True)

        adj_counts, deg_inv, tiles = prepare_graph(edge_index, n)  # built once
        out = base_hgnn_forward(params, x, adj_counts, deg_inv, tiles,
                                num_layers=num_layers)
        out = jax.block_until_ready(out)

        ref = _reference_forward(params, x, edge_index, num_layers=num_layers)
        assert out.shape == (n, c_out), out.shape
        err = float(jnp.max(jnp.abs(out - ref)))
        assert jnp.allclose(out, ref, atol=3e-2, rtol=3e-2), err

    # Module-default shapes (num_layers=2), single-tile grid.
    run_case(16, 32, 8, 32, 16, 2, jax.random.fold_in(key, 0))
    # Larger graph: 2 row tiles x 2 reduction steps, 3 layers (exercises the
    # accumulation path, the resident-xW slicing and the layer loop).
    run_case(300, 900, 8, 32, 16, 3, jax.random.fold_in(key, 1))

    print("KERNEL_OK")
</pallas_src>

<mosaic_0001>
module attributes {stable_mosaic.version = 11 : i64} {
  func.func @_linear_kernel(%arg0: i32, %arg1: memref<128x128xf32, #tpu.memory_space<vmem>>, %arg2: memref<128x128xf32, #tpu.memory_space<vmem>>, %arg3: memref<1x128xf32, #tpu.memory_space<vmem>>, %arg4: memref<128x128xf32, #tpu.memory_space<vmem>>) attributes {dimension_semantics = [#tpu.dimension_semantics<parallel>], iteration_bounds = array<i64: 1>, scalar_prefetch = 0 : i64, scratch_operands = 0 : i64, tpu.core_type = #tpu.core_type<tc>, window_params = [{transform_indices = @transform_0, window_bounds = array<i64: 128, 128>}, {pipeline_mode = #tpu.pipeline_mode<synchronous>, transform_indices = @transform_1, window_bounds = array<i64: 128, 128>}, {pipeline_mode = #tpu.pipeline_mode<synchronous>, transform_indices = @transform_2, window_bounds = array<i64: 1, 128>}, {transform_indices = @transform_3, window_bounds = array<i64: 128, 128>}]} {
    %c0 = arith.constant 0 : index
    %c0_0 = arith.constant 0 : index
    %0 = vector.load %arg1[%c0, %c0_0] : memref<128x128xf32, #tpu.memory_space<vmem>>, vector<128x128xf32>
    %c0_1 = arith.constant 0 : index
    %c0_2 = arith.constant 0 : index
    %1 = vector.load %arg2[%c0_1, %c0_2] : memref<128x128xf32, #tpu.memory_space<vmem>>, vector<128x128xf32>
    %cst = arith.constant dense<0.000000e+00> : vector<128x128xf32>
    %2 = tpu.matmul %0, %1, %cst {dimension_numbers = #tpu.dot_dimension_numbers<[1], [0], [0], [1], [0, 0, 1, 1], [], []>} : vector<128x128xf32>, vector<128x128xf32>, vector<128x128xf32> -> vector<128x128xf32>
    %c0_3 = arith.constant 0 : index
    %c0_4 = arith.constant 0 : index
    %3 = vector.load %arg3[%c0_3, %c0_4] : memref<1x128xf32, #tpu.memory_space<vmem>>, vector<1x128xf32>
    %4 = vector.broadcast %3 : vector<1x128xf32> to vector<128x128xf32>
    %5 = arith.addf %2, %4 : vector<128x128xf32>
    %c0_5 = arith.constant 0 : index
    %c0_6 = arith.constant 0 : index
    %6 = vector.load %arg4[%c0_5, %c0_6] : memref<128x128xf32, #tpu.memory_space<vmem>>, vector<128x128xf32>
    tpu.vector_store %arg4[%c0_5, %c0_6], %5 {strides = array<i32>} : memref<128x128xf32, #tpu.memory_space<vmem>>, vector<128x128xf32>,
    return
  }
  func.func @transform_0(%arg0: i32) -> (i32, i32) {
    %c0_i32 = arith.constant 0 : i32
    %c0_i32_0 = arith.constant 0 : i32
    return %arg0, %c0_i32 : i32, i32
  }
  func.func @transform_1(%arg0: i32) -> (i32, i32) {
    %c0_i32 = arith.constant 0 : i32
    %c0_i32_0 = arith.constant 0 : i32
    %c0_i32_1 = arith.constant 0 : i32
    return %c0_i32, %c0_i32_0 : i32, i32
  }
  func.func @transform_2(%arg0: i32) -> (i32, i32) {
    %c0_i32 = arith.constant 0 : i32
    %c0_i32_0 = arith.constant 0 : i32
    %c0_i32_1 = arith.constant 0 : i32
    return %c0_i32, %c0_i32_0 : i32, i32
  }
  func.func @transform_3(%arg0: i32) -> (i32, i32) {
    %c0_i32 = arith.constant 0 : i32
    %c0_i32_0 = arith.constant 0 : i32
    return %arg0, %c0_i32 : i32, i32
  }
}

</mosaic_0001>

<bundles_post_ra>
// kernel: tpu_custom_call.1
= control target key start
LH: loop header
LB: loop body
LE: loop exit
PB: predicated region body
PF: predicated region fallthrough
CT: control target
= control target key end

     0   :  { %8 = vsyncpa [#allocation3], 0  ;;  %s548_s0 = inlined_call_operand.hbm [shape: f32[128,128], index: 0, kind: input, shape index: {}]   ;;  %s549_s1 = inlined_call_operand.hbm [shape: f32[128,128], index: 1, kind: input, shape index: {}]   ;;  %s550_s2 = inlined_call_operand.vmem [shape: f32[1,128], index: 2, kind: input, shape index: {}]   ;;  %s551_s3 = inlined_call_operand.hbm [shape: f32[128,128], index: 3, kind: output, shape index: {}]  }
   0x1   :  { %9 = vsyncpa [#allocation6], 0 }
   0x2   :  { %10 = vsyncpa [#allocation4], 0  ;;  %s475_s12 = smov [#allocation2]   ;;  %s403_s16 = scalar_lea.hbm %s548_s0, 2048 }
   0x3   :  { %s16_s13 = sshll.u32 %s475_s12, 4  ;;  %p404_p0 = scmp.ne.s32.totalorder %s548_s0, %s403_s16  ;;  %s17_s13 = int_to_ptr.vmem [resolvable:$true] %s16_s13 }
   0x4   :  { %p407_p1 = scmp.lt.u32.totalorder %s403_s16, %s548_s0 }
   0x6   :  { %p409_p2 = pnand %p407_p1, %p404_p0 }
   0x8   :  { %412 = shalt.err (!%p409_p2)
}
   0x9   :  { %s413_s21 = scalar_lea.vmem %s17_s13, 2048  ;;  %p418_p4 = scmp.lt.s32.totalorder %s17_s13, %s17_s13 }
   0xa   :  { %p414_p3 = scmp.ne.s32.totalorder %s17_s13, %s413_s21  ;;  %p419_p5 = scmp.lt.s32.totalorder %s413_s21, %s413_s21 }
   0xc   :  { %p420_p6 = por %p419_p5, %p418_p4 }
   0xe   :  { %p421_p7 = pnand %p420_p6, %p414_p3 }
  0x10   :  { %424 = shalt.err (!%p421_p7)
}
  0x11   :  { %s476_s22 = smov 128   ;;  %s477_s23 = smov 8  }
  0x12   :  { %22 = dma.hbm_to_vmem [thread:$0]  %s548_s0, 2048, %s17_s13, [#allocation3], %s476_s22, %s476_s22, %s477_s23  }
  0x13   :  { %s478_s26 = smov [#allocation5]   ;;  %s425_s30 = scalar_lea.hbm %s549_s1, 2048 }
  0x14   :  { %s28_s27 = sshll.u32 %s478_s26, 4  ;;  %p426_p8 = scmp.ne.s32.totalorder %s549_s1, %s425_s30  ;;  %s29_s27 = int_to_ptr.vmem [resolvable:$true] %s28_s27 }
  0x15   :  { %p429_p9 = scmp.lt.u32.totalorder %s425_s30, %s549_s1 }
  0x17   :  { %p431_p10 = pnand %p429_p9, %p426_p8 }
  0x19   :  { %434 = shalt.err (!%p431_p10)
}
  0x1a   :  { %s435_s8 = scalar_lea.vmem %s29_s27, 2048  ;;  %p440_p12 = scmp.lt.s32.totalorder %s29_s27, %s29_s27 }
  0x1b   :  { %p436_p11 = scmp.ne.s32.totalorder %s29_s27, %s435_s8  ;;  %p441_p13 = scmp.lt.s32.totalorder %s435_s8, %s435_s8 }
  0x1d   :  { %p442_p0 = por %p441_p13, %p440_p12 }
  0x1f   :  { %p443_p1 = pnand %p442_p0, %p436_p11 }
  0x21   :  { %446 = shalt.err (!%p443_p1)
}
  0x22   :  { %34 = dma.hbm_to_vmem [thread:$0]  %s549_s1, 2048, %s29_s27, [#allocation6], %s476_s22, %s476_s22, %s477_s23  }
  0x23   :  { %469 = dma.done.wait [#allocation3], 2048  }
  0x24   :  { %470 = vsyncadd [#allocation3], 4294965248 }
  0x25   :  { %471 = dma.done.wait [#allocation6], 2048  }
  0x26   :  { %472 = vsyncadd [#allocation6], 4294965248  ;;  %v59_v0 = vld [vmem:[#allocation5] sm:$0xff]  ;;  %v60_v1 = vld [vmem:[#allocation5 + $0x8] sm:$0xff] }
  0x27   :  { %v61_v2 = vld [vmem:[#allocation5 + $0x10] sm:$0xff]  ;;  %v350_v3 = vpack.c.bf16 %v60_v1, %v59_v0  ;;  %v62_v4 = vld [vmem:[#allocation5 + $0x18] sm:$0xff]  ;;  %v63_v6 = vld [vmem:[#allocation5 + $0x20] sm:$0xff] }
  0x28   :  { %v354_v5 = vpack.c.bf16 %v62_v4, %v61_v2  ;;  %v64_v7 = vld [vmem:[#allocation5 + $0x28] sm:$0xff]  ;;  %v43_v9 = vld [vmem:[#allocation2] sm:$0xff]  ;;  %v65_v11 = vld [vmem:[#allocation5 + $0x30] sm:$0xff] }
  0x29   :  { %351 = vmatprep.subr.bf16.mxu0 %v350_v3  ;;  %382 = vmatprep.subr.bf16.mxu1 %v350_v3  ;;  %v358_v8 = vpack.c.bf16 %v64_v7, %v63_v6  ;;  %v51_v10 = vld [vmem:[#allocation2 + $0x40] sm:$0xff]  ;;  %v66_v12 = vld [vmem:[#allocation5 + $0x38] sm:$0xff]  ;;  %v68_v15 = vld [vmem:[#allocation5 + $0x48] sm:$0xff] }
  0x2a   :  { %353 = vmatpush3.bf16.msra.mxu0 %v350_v3  ;;  %390 = vmatpush3.bf16.msra.mxu1 %v350_v3  ;;  %v362_v13 = vpack.c.bf16 %v66_v12, %v65_v11  ;;  %v67_v14 = vld [vmem:[#allocation5 + $0x40] sm:$0xff]  ;;  %v69_v17 = vld [vmem:[#allocation5 + $0x50] sm:$0xff]  ;;  %v70_v18 = vld [vmem:[#allocation5 + $0x58] sm:$0xff] }
  0x2b   :  { %355 = vmatprep.subr.bf16.mxu0 %v354_v5  ;;  %383 = vmatprep.subr.bf16.mxu1 %v354_v5  ;;  %v366_v16 = vpack.c.bf16 %v68_v15, %v67_v14  ;;  %v370_v19 = vpack.c.bf16 %v70_v18, %v69_v17  ;;  %v71_v20 = vld [vmem:[#allocation5 + $0x60] sm:$0xff]  ;;  %v72_v21 = vld [vmem:[#allocation5 + $0x68] sm:$0xff]  ;;  %v73_v23 = vld [vmem:[#allocation5 + $0x70] sm:$0xff] }
  0x2c   :  { %326 = vmatprep.mubr.f32.mxu0 %v43_v9  ;;  %338 = vmatprep.mubr.f32.mxu1 %v51_v10  ;;  %v374_v22 = vpack.c.bf16 %v72_v21, %v71_v20  ;;  %v74_v24 = vld [vmem:[#allocation5 + $0x78] sm:$0xff]  ;;  %v44_v26 = vld [vmem:[#allocation2 + $0x8] sm:$0xff]  ;;  %v45_v28 = vld [vmem:[#allocation2 + $0x10] sm:$0xff] }
  0x2d   :  { %v378_v25 = vpack.c.bf16 %v74_v24, %v73_v23  ;;  %v52_v27 = vld [vmem:[#allocation2 + $0x48] sm:$0xff]  ;;  %v53_v29 = vld [vmem:[#allocation2 + $0x50] sm:$0xff]  ;;  %v46_v30 = vld [vmem:[#allocation2 + $0x18] sm:$0xff] }
  0x2e   :  { %357 = vmatpush3.bf16.msra.mxu0 %v354_v5  ;;  %391 = vmatpush3.bf16.msra.mxu1 %v354_v5  ;;  %v54_v31 = vld [vmem:[#allocation2 + $0x58] sm:$0xff]  ;;  %v47_v32 = vld [vmem:[#allocation2 + $0x20] sm:$0xff]  ;;  %v48_v34 = vld [vmem:[#allocation2 + $0x28] sm:$0xff] }
  0x2f   :  { %359 = vmatprep.subr.bf16.mxu0 %v358_v8  ;;  %384 = vmatprep.subr.bf16.mxu1 %v358_v8  ;;  %v55_v33 = vld [vmem:[#allocation2 + $0x60] sm:$0xff]  ;;  %v56_v35 = vld [vmem:[#allocation2 + $0x68] sm:$0xff]  ;;  %v49_v36 = vld [vmem:[#allocation2 + $0x30] sm:$0xff] }
  0x30   :  { %v57_v37 = vld [vmem:[#allocation2 + $0x70] sm:$0xff]  ;;  %v50_v38 = vld [vmem:[#allocation2 + $0x38] sm:$0xff]  ;;  %v261_v40 = vld [vmem:[%s550_s2] ss:$0 sm:$0xff]  ;;  %s479_s2 = smov [#allocation7]  }
  0x31   :  { %v58_v39 = vld [vmem:[#allocation2 + $0x78] sm:$0xff]  ;;  %s248_s11 = sshll.u32 %s479_s2, 4  ;;  %s249_s11 = int_to_ptr.vmem [resolvable:$true] %s248_s11 }
  0x32   :  { %361 = vmatpush3.bf16.msra.mxu0 %v358_v8  ;;  %392 = vmatpush3.bf16.msra.mxu1 %v358_v8  ;;  %s447_s12 = scalar_lea.vmem %s249_s11, 2048  ;;  %p452_p3 = scmp.lt.s32.totalorder %s249_s11, %s249_s11 }
  0x33   :  { %363 = vmatprep.subr.bf16.mxu0 %v362_v13  ;;  %385 = vmatprep.subr.bf16.mxu1 %v362_v13  ;;  %p448_p2 = scmp.ne.s32.totalorder %s249_s11, %s447_s12  ;;  %p453_p4 = scmp.lt.s32.totalorder %s447_s12, %s447_s12 }
  0x35   :  { %p454_p5 = por %p453_p4, %p452_p3 }
  0x36   :  { %365 = vmatpush3.bf16.msra.mxu0 %v362_v13  ;;  %393 = vmatpush3.bf16.msra.mxu1 %v362_v13 }
  0x37   :  { %367 = vmatprep.subr.bf16.mxu0 %v366_v16  ;;  %386 = vmatprep.subr.bf16.mxu1 %v366_v16  ;;  %p455_p6 = pnand %p454_p5, %p448_p2 }
  0x3a   :  { %369 = vmatpush3.bf16.msra.mxu0 %v366_v16  ;;  %394 = vmatpush3.bf16.msra.mxu1 %v366_v16 }
  0x3b   :  { %371 = vmatprep.subr.bf16.mxu0 %v370_v19  ;;  %387 = vmatprep.subr.bf16.mxu1 %v370_v19 }
  0x3e   :  { %373 = vmatpush3.bf16.msra.mxu0 %v370_v19  ;;  %395 = vmatpush3.bf16.msra.mxu1 %v370_v19 }
  0x3f   :  { %375 = vmatprep.subr.bf16.mxu0 %v374_v22  ;;  %388 = vmatprep.subr.bf16.mxu1 %v374_v22 }
  0x42   :  { %377 = vmatpush3.bf16.msra.mxu0 %v374_v22  ;;  %396 = vmatpush3.bf16.msra.mxu1 %v374_v22 }
  0x43   :  { %379 = vmatprep.subr.bf16.mxu0 %v378_v25  ;;  %389 = vmatprep.subr.bf16.mxu1 %v378_v25 }
  0x46   :  { %381 = vmatpush3.bf16.msra.mxu0 %v378_v25  ;;  %397 = vmatpush3.bf16.msra.mxu1 %v378_v25 }
  0x49   :  { %327 = vmatmul.mubr.f32.vlgmr.msra.gmra.mrb[0].mxu0 %v44_v26  ;;  %339 = vmatmul.mubr.f32.vlgmr.msra.gmra.mrb[0].mxu1 %v52_v27 }
  0x4a   :  { %329 = vmatprep.mubr.f32.mxu0 %v45_v28  ;;  %341 = vmatprep.mubr.f32.mxu1 %v53_v29 }
  0x4d   :  { %330 = vmatmul.mubr.f32.gmra.mrb[2].mxu0 %v46_v30  ;;  %342 = vmatmul.mubr.f32.gmra.mrb[2].mxu1 %v54_v31 }
  0x4e   :  { %332 = vmatprep.mubr.f32.mxu0 %v47_v32  ;;  %344 = vmatprep.mubr.f32.mxu1 %v55_v33 }
  0x51   :  { %333 = vmatmul.mubr.f32.gmra.mrb[4].mxu0 %v48_v34  ;;  %345 = vmatmul.mubr.f32.gmra.mrb[4].mxu1 %v56_v35 }
  0x52   :  { %335 = vmatprep.mubr.f32.mxu0 %v49_v36  ;;  %347 = vmatprep.mubr.f32.mxu1 %v57_v37 }
  0x55   :  { %336 = vmatmul.mubr.f32.gmra.mrb[6].mxu0 %v50_v38  ;;  %348 = vmatmul.mubr.f32.gmra.mrb[6].mxu1 %v58_v39 }
 0x11c   :  { %v328_v41 = vpop.f32.mrb[0].mxu0  ;;  %v340_v42 = vpop.f32.mrb[0].mxu1 }
 0x11d   :  { %v154_v43 = vadd.f32 %v328_v41, %v261_v40  ;;  %v194_v44 = vadd.f32 %v340_v42, %v261_v40  ;;  %v148_v45 = vpop.f32.mrb[1].mxu0  ;;  %v188_v46 = vpop.f32.mrb[1].mxu1 }
 0x11e   :  { %v149_v47 = vadd.f32 %v261_v40, %v148_v45  ;;  %v189_v48 = vadd.f32 %v261_v40, %v188_v46 }
 0x11f   :  { %228 = vst [vmem:[#allocation7 + $0x8] sm:$0xff] %v154_v43  ;;  %236 = vst [vmem:[#allocation7 + $0x48] sm:$0xff] %v194_v44 }
 0x120   :  { %227 = vst [vmem:[#allocation7] sm:$0xff] %v149_v47  ;;  %235 = vst [vmem:[#allocation7 + $0x40] sm:$0xff] %v189_v48  ;;  %v331_v49 = vpop.f32.mrb[2].mxu0  ;;  %v343_v50 = vpop.f32.mrb[2].mxu1 }
 0x121   :  { %v164_v51 = vadd.f32 %v331_v49, %v261_v40  ;;  %v204_v52 = vadd.f32 %v343_v50, %v261_v40  ;;  %v158_v53 = vpop.f32.mrb[3].mxu0  ;;  %v198_v54 = vpop.f32.mrb[3].mxu1 }
 0x122   :  { %v159_v55 = vadd.f32 %v261_v40, %v158_v53  ;;  %v199_v56 = vadd.f32 %v261_v40, %v198_v54 }
 0x123   :  { %230 = vst [vmem:[#allocation7 + $0x18] sm:$0xff] %v164_v51  ;;  %238 = vst [vmem:[#allocation7 + $0x58] sm:$0xff] %v204_v52 }
 0x124   :  { %229 = vst [vmem:[#allocation7 + $0x10] sm:$0xff] %v159_v55  ;;  %237 = vst [vmem:[#allocation7 + $0x50] sm:$0xff] %v199_v56  ;;  %v334_v57 = vpop.f32.mrb[4].mxu0  ;;  %v346_v58 = vpop.f32.mrb[4].mxu1 }
 0x125   :  { %v174_v59 = vadd.f32 %v334_v57, %v261_v40  ;;  %v214_v60 = vadd.f32 %v346_v58, %v261_v40  ;;  %v168_v61 = vpop.f32.mrb[5].mxu0  ;;  %v208_v62 = vpop.f32.mrb[5].mxu1 }
 0x126   :  { %v169_v63 = vadd.f32 %v261_v40, %v168_v61  ;;  %v209_v0 = vadd.f32 %v261_v40, %v208_v62 }
 0x127   :  { %232 = vst [vmem:[#allocation7 + $0x28] sm:$0xff] %v174_v59  ;;  %240 = vst [vmem:[#allocation7 + $0x68] sm:$0xff] %v214_v60 }
 0x128   :  { %231 = vst [vmem:[#allocation7 + $0x20] sm:$0xff] %v169_v63  ;;  %239 = vst [vmem:[#allocation7 + $0x60] sm:$0xff] %v209_v0  ;;  %v337_v1 = vpop.f32.mrb[6].mxu0  ;;  %v349_v2 = vpop.f32.mrb[6].mxu1 }
 0x129   :  { %v184_v3 = vadd.f32 %v337_v1, %v261_v40  ;;  %v224_v4 = vadd.f32 %v349_v2, %v261_v40  ;;  %v178_v5 = vpop.f32.mrb[7].mxu0  ;;  %v218_v6 = vpop.f32.mrb[7].mxu1 }
 0x12a   :  { %v179_v7 = vadd.f32 %v261_v40, %v178_v5  ;;  %v219_v8 = vadd.f32 %v261_v40, %v218_v6 }
 0x12b   :  { %234 = vst [vmem:[#allocation7 + $0x38] sm:$0xff] %v184_v3  ;;  %242 = vst [vmem:[#allocation7 + $0x78] sm:$0xff] %v224_v4 }
 0x12c   :  { %233 = vst [vmem:[#allocation7 + $0x30] sm:$0xff] %v179_v7  ;;  %241 = vst [vmem:[#allocation7 + $0x70] sm:$0xff] %v219_v8 }
 0x12d   :  { %458 = shalt.err (!%p455_p6)
}
 0x12e   :  { %s459_s15 = scalar_lea.hbm %s551_s3, 2048 }
 0x12f   :  { %p460_p7 = scmp.ne.s32.totalorder %s551_s3, %s459_s15  ;;  %p463_p8 = scmp.lt.u32.totalorder %s459_s15, %s551_s3 }
 0x131   :  { %p465_p9 = pnand %p463_p8, %p460_p7 }
 0x133   :  { %468 = shalt.err (!%p465_p9)
}
 0x134   :  { %254 = dma.vmem_to_hbm [thread:$0]  %s249_s11, 2048, %s551_s3, [#allocation4], %s476_s22, %s476_s22, %s477_s23  }
 0x135   :  { %473 = dma.done.wait [#allocation4], 2048  }
 0x136   :  { %474 = vsyncadd [#allocation4], 4294965248 }
 0x137   :  { %258 = vsyncpa [#allocation3], 1 }
 0x138   :  { %259 = vsyncpa [#allocation6], 1 }
 0x139   :  { %260 = vsyncpa [#allocation4], 1 }

</bundles_post_ra>
